<compile_context>
chip_gen: v5e
topology: v5e:2x2
jax: 0.10.0
libtpu: 0.0.40
codegen_flags: <defaults>
</compile_context>

<pallas_src>
import functools

import jax
import jax.numpy as jnp
import numpy as np
from jax.experimental import pallas as pl
from jax.experimental.pallas import tpu as pltpu


def _round_up(x, m):
    return ((x + m - 1) // m) * m


# ------------------------- Buffered(1) support probe ------------------------
def _probe_kernel(a_ref, w_ref, o_ref):
    o_ref[...] = a_ref[...] + w_ref[...]


@functools.lru_cache(maxsize=None)
def _single_buffered_weights_supported():
    """Probe (eagerly, OUTSIDE any jit) whether pipeline_mode=pl.Buffered(1)
    is accepted; fall back to default double-buffering otherwise."""
    try:
        out = pl.pallas_call(
            _probe_kernel,
            out_shape=jax.ShapeDtypeStruct((16, 128), jnp.float32),
            grid=(2,),
            in_specs=[
                pl.BlockSpec((8, 128), lambda i: (i, 0)),
                pl.BlockSpec((8, 128), lambda i: (0, 0),
                             pipeline_mode=pl.Buffered(1)),
            ],
            out_specs=pl.BlockSpec((8, 128), lambda i: (i, 0)),
        )(jnp.zeros((16, 128), jnp.float32), jnp.ones((8, 128), jnp.float32))
        jax.block_until_ready(out)
        return True
    except Exception:   # any failure -> default 2x buffering (still correct)
        return False


# ----------------------------- Pallas kernel --------------------------------
def encoder_mlp_kernel(x_ref, w1_ref, b1_ref, w2_ref, b2_ref,
                       w3_ref, b3_ref, w4_ref, b4_ref, o_ref):
    """4-layer MLP (Linear->ReLU x3 -> Linear) on one batch tile.

    x_ref : (tb, in_p)   matmul-dtype activations (lane-dense, zero-padded)
    w*_ref: (in_p, out_p) weights in the matmul dtype (bf16 by default)
    b*_ref: (1, out_p)   f32 biases (elementwise chain stays f32 -> v5e-safe)
    o_ref : (tb, out_p)  output in the final dtype
    """
    mm_dtype = w1_ref.dtype
    h = jnp.dot(x_ref[...], w1_ref[...], preferred_element_type=jnp.float32)
    h = jnp.maximum(h + b1_ref[...], 0.0)
    h = jnp.dot(h.astype(mm_dtype), w2_ref[...],
                preferred_element_type=jnp.float32)
    h = jnp.maximum(h + b2_ref[...], 0.0)
    h = jnp.dot(h.astype(mm_dtype), w3_ref[...],
                preferred_element_type=jnp.float32)
    h = jnp.maximum(h + b3_ref[...], 0.0)
    out = jnp.dot(h.astype(mm_dtype), w4_ref[...],
                  preferred_element_type=jnp.float32) + b4_ref[...]
    o_ref[...] = out.astype(o_ref.dtype)


# --------------------------- tiling / VMEM budget ----------------------------
def _pick_batch_tile(bp):
    """Batch tile (multiple of 16 for bf16 sublane packing).  Large batches use
    256-row tiles (MXU-native row depth on v6e/v7x) with >= 2 grid steps so the
    'parallel' axis has work for v7x's second TensorCore; small batches are
    split in two rather than running a 1-step grid."""
    if bp <= 16:
        return bp
    if bp >= 512:
        return 256
    half = (bp // 2) // 16 * 16
    return max(16, half)


def _vmem_budget_bytes(tb, in_p, h_p, out_p, *, weight_bytes, weight_buffers,
                       act_itemsize, out_itemsize):
    """Derived scoped-VMEM budget: resident weights * buffer_count +
    double-buffered activation I/O tiles + f32 body temporaries + headroom.
    Capped well under v7x's 64 MiB physical VMEM."""
    act_io = 2 * tb * in_p * act_itemsize + 2 * tb * out_p * out_itemsize
    body_tmp = 2 * tb * max(h_p, out_p) * 4
    total = weight_bytes * weight_buffers + act_io + body_tmp
    total = int(total * 1.25) + (2 << 20)          # 25% + 2 MiB compiler scratch
    floor = 8 * 1024 * 1024
    ceil = 48 * 1024 * 1024                        # < 3/4 of v7x's 64 MiB
    return max(floor, min(total, ceil))


def run_mlp_pallas(x_pad, params, *, out_dtype, single_buffer_weights):
    """x_pad: (bp, in_p); feature dims 128-padded, bp a multiple of 16."""
    w1, b1, w2, b2, w3, b3, w4, b4 = params
    bp, in_p = x_pad.shape
    h_p = w1.shape[1]
    out_p = w4.shape[1]

    tb = _pick_batch_tile(bp)
    n_steps = pl.cdiv(bp, tb)        # ragged last block is clipped by Pallas

    act_in = pl.BlockSpec((tb, in_p), lambda i: (i, 0))
    act_out = pl.BlockSpec((tb, out_p), lambda i: (i, 0))

    def resident(arr):
        # Constant block index -> stays VMEM-resident across grid steps (no
        # re-DMA); single-buffered when supported (weights never change).
        if single_buffer_weights:
            return pl.BlockSpec(arr.shape, lambda i: (0, 0),
                                pipeline_mode=pl.Buffered(1))
        return pl.BlockSpec(arr.shape, lambda i: (0, 0))

    weight_buffers = 1 if single_buffer_weights else 2
    weight_bytes = sum(int(a.size) * a.dtype.itemsize
                       for a in (w1, b1, w2, b2, w3, b3, w4, b4))
    vmem_budget = _vmem_budget_bytes(
        tb, in_p, h_p, out_p,
        weight_bytes=weight_bytes, weight_buffers=weight_buffers,
        act_itemsize=x_pad.dtype.itemsize,
        out_itemsize=np.dtype(out_dtype).itemsize)

    return pl.pallas_call(
        encoder_mlp_kernel,
        out_shape=jax.ShapeDtypeStruct((bp, out_p), out_dtype),
        grid_spec=pltpu.PrefetchScalarGridSpec(
            num_scalar_prefetch=0,
            grid=(n_steps,),
            in_specs=[act_in,
                      resident(w1), resident(b1),
                      resident(w2), resident(b2),
                      resident(w3), resident(b3),
                      resident(w4), resident(b4)],
            out_specs=act_out,
        ),
        compiler_params=pltpu.CompilerParams(
            # Independent batch tiles -> shard across v7x's 2 TensorCores
            # (harmless single-TC no-op on v5e/v6e).
            dimension_semantics=("parallel",),
            vmem_limit_bytes=vmem_budget,
        ),
    )(x_pad, w1, b1, w2, b2, w3, b3, w4, b4)


# ----------------------------- Encoder wrapper -------------------------------
class EncoderPallas:
    """JAX/Pallas port of the PyTorch Encoder module."""

    def __init__(self, nxny, M, hidden_dim, P, control_indices, key,
                 compute_dtype=jnp.bfloat16):
        assert len(control_indices) == M
        # The original module's boolean-mask scatter into y (length P) only
        # lines up when P == nxny.
        assert P == nxny, "Encoder requires P == nxny for the mask scatter."
        self.nxny, self.M, self.P, self.hidden_dim = nxny, M, P, hidden_dim
        self.compute_dtype = compute_dtype

        ctrl = np.asarray(control_indices, dtype=np.int64)
        mask = np.ones(nxny, dtype=bool)
        mask[ctrl] = False
        non_ctrl = np.nonzero(mask)[0]
        self.control_indices = jnp.asarray(ctrl, jnp.int32)
        self.non_control_indices = jnp.asarray(non_ctrl, jnp.int32)

        # 0/1 mask over P for the fused recombine y = mlp_out + x * ctrl_mask.
        cm = np.zeros(P, np.float32)
        cm[ctrl] = 1.0
        self.ctrl_mask = jnp.asarray(cm)

        # Logical (unpadded) layer dims, as in the nn.Sequential.
        self.din = nxny - M
        self.dout = P - M
        dims = [self.din, hidden_dim, hidden_dim, hidden_dim, self.dout]

        # Lane-dense padded kernel dims.  Input gather folded into W1 -> the
        # kernel consumes the FULL x row; output scatter folded into W4 -> the
        # kernel produces the FULL y row (control columns exactly zero).
        self.in_p = _round_up(nxny, 128)
        self.h_p = _round_up(hidden_dim, 128)
        self.out_p = _round_up(P, 128)

        # nn.Linear-style init, U(-1/sqrt(fan_in), 1/sqrt(fan_in)); weights
        # stored (in, out) so the kernel computes x @ W + b directly.
        ws, bs = [], []
        for i in range(4):
            key, kw, kb = jax.random.split(key, 3)
            fan_in, fan_out = dims[i], dims[i + 1]
            bound = 1.0 / np.sqrt(fan_in)
            ws.append(np.asarray(jax.random.uniform(
                kw, (fan_in, fan_out), jnp.float32, -bound, bound)))
            bs.append(np.asarray(jax.random.uniform(
                kb, (1, fan_out), jnp.float32, -bound, bound)))
        self.weights_f32 = tuple(jnp.asarray(w) for w in ws)
        self.biases_f32 = tuple(jnp.asarray(b) for b in bs)

        # Padded / folded kernel parameters (zero padding is numerically exact).
        w1p = np.zeros((self.in_p, self.h_p), np.float32)
        w1p[non_ctrl, :hidden_dim] = ws[0]                 # gather folded in
        b1p = np.zeros((1, self.h_p), np.float32)
        b1p[0, :hidden_dim] = bs[0][0]

        w2p = np.zeros((self.h_p, self.h_p), np.float32)
        w2p[:hidden_dim, :hidden_dim] = ws[1]
        b2p = np.zeros((1, self.h_p), np.float32)
        b2p[0, :hidden_dim] = bs[1][0]

        w3p = np.zeros((self.h_p, self.h_p), np.float32)
        w3p[:hidden_dim, :hidden_dim] = ws[2]
        b3p = np.zeros((1, self.h_p), np.float32)
        b3p[0, :hidden_dim] = bs[2][0]

        w4p = np.zeros((self.h_p, self.out_p), np.float32)
        w4p[:hidden_dim, non_ctrl] = ws[3]                 # scatter folded in
        b4p = np.zeros((1, self.out_p), np.float32)
        b4p[0, non_ctrl] = bs[3][0]

        cd = compute_dtype
        self.params_padded = (
            jnp.asarray(w1p, cd), jnp.asarray(b1p, jnp.float32),
            jnp.asarray(w2p, cd), jnp.asarray(b2p, jnp.float32),
            jnp.asarray(w3p, cd), jnp.asarray(b3p, jnp.float32),
            jnp.asarray(w4p, cd), jnp.asarray(b4p, jnp.float32),
        )

        # Probe Buffered(1) support EAGERLY (outside jit), cache the result.
        self._single_buffer_weights = _single_buffered_weights_supported()

        # The whole forward pass traces as ONE jitted graph.
        self._forward = jax.jit(self._forward_impl)

    def _forward_impl(self, x):
        batch = x.shape[0]
        x_f32 = x.astype(jnp.float32)
        # Pad batch only to the bf16 sublane quantum (16); no tile-sized pad.
        bp = _round_up(batch, 16)
        x_pad = jnp.pad(x_f32, ((0, bp - batch), (0, self.in_p - self.nxny)))
        out = run_mlp_pallas(
            x_pad.astype(self.compute_dtype), self.params_padded,
            out_dtype=jnp.float32,
            single_buffer_weights=self._single_buffer_weights)
        y_mlp = out[:batch, :self.P]       # control columns are exactly 0 here
        # Fused recombine (one VPU op): control positions carry x through
        # exactly in f32; everything else is the MLP output.
        y = y_mlp + x_f32 * self.ctrl_mask
        return y.astype(x.dtype)

    def __call__(self, x):
        return self._forward(x)

    def reference(self, x):
        """Pure-JAX f32 reference with the original module's semantics."""
        w1, w2, w3, w4 = self.weights_f32
        b1, b2, b3, b4 = self.biases_f32
        xf = x.astype(jnp.float32)
        xn = xf[:, self.non_control_indices]
        h = jnp.maximum(xn @ w1 + b1, 0.0)
        h = jnp.maximum(h @ w2 + b2, 0.0)
        h = jnp.maximum(h @ w3 + b3, 0.0)
        y_nc = h @ w4 + b4
        y = jnp.zeros((x.shape[0], self.P), jnp.float32)
        y = y.at[:, self.control_indices].set(xf[:, self.control_indices])
        y = y.at[:, self.non_control_indices].set(y_nc)
        return y.astype(x.dtype)


# ----------------------------------- main ------------------------------------
if __name__ == "__main__":
    # Small, self-consistent shapes (P == nxny so the mask scatter lines up).
    batch = 24           # not a multiple of 16 -> exercises batch padding
    nxny = 64
    M = 8
    P = nxny
    hidden_dim = 32
    control_indices = np.arange(0, nxny, nxny // M)[:M]    # 8 control points

    key = jax.random.PRNGKey(0)
    key, k_init, k_x = jax.random.split(key, 3)

    encoder = EncoderPallas(nxny, M, hidden_dim, P, control_indices, k_init)
    x = jax.random.normal(k_x, (batch, nxny), dtype=jnp.float32)

    y = jax.block_until_ready(encoder(x))
    y_ref = jax.block_until_ready(encoder.reference(x))

    # bf16 matmul operands (f32 accumulation) vs f32 reference -> loosened tol.
    np.testing.assert_allclose(np.asarray(y), np.asarray(y_ref),
                               rtol=3e-2, atol=3e-2)
    # Control columns must pass x through exactly (fold keeps them in f32).
    np.testing.assert_array_equal(np.asarray(y)[:, control_indices],
                                  np.asarray(x)[:, control_indices])
    print("KERNEL_OK")
</pallas_src>

<mosaic_0001>
module attributes {stable_mosaic.version = 11 : i64} {
  func.func @_probe_kernel(%arg0: i32, %arg1: memref<8x128xf32, #tpu.memory_space<vmem>>, %arg2: memref<8x128xf32, #tpu.memory_space<vmem>>, %arg3: memref<8x128xf32, #tpu.memory_space<vmem>>) attributes {dimension_semantics = [#tpu.dimension_semantics<arbitrary>], iteration_bounds = array<i64: 2>, scalar_prefetch = 0 : i64, scratch_operands = 0 : i64, tpu.core_type = #tpu.core_type<tc>, window_params = [{transform_indices = @transform_0, window_bounds = array<i64: 8, 128>}, {pipeline_mode = #tpu.pipeline_mode<synchronous>, transform_indices = @transform_1, window_bounds = array<i64: 8, 128>}, {transform_indices = @transform_2, window_bounds = array<i64: 8, 128>}]} {
    %c0 = arith.constant 0 : index
    %c0_0 = arith.constant 0 : index
    %0 = vector.load %arg1[%c0, %c0_0] : memref<8x128xf32, #tpu.memory_space<vmem>>, vector<8x128xf32>
    %c0_1 = arith.constant 0 : index
    %c0_2 = arith.constant 0 : index
    %1 = vector.load %arg2[%c0_1, %c0_2] : memref<8x128xf32, #tpu.memory_space<vmem>>, vector<8x128xf32>
    %2 = arith.addf %0, %1 : vector<8x128xf32>
    %c0_3 = arith.constant 0 : index
    %c0_4 = arith.constant 0 : index
    %3 = vector.load %arg3[%c0_3, %c0_4] : memref<8x128xf32, #tpu.memory_space<vmem>>, vector<8x128xf32>
    tpu.vector_store %arg3[%c0_3, %c0_4], %2 {strides = array<i32>} : memref<8x128xf32, #tpu.memory_space<vmem>>, vector<8x128xf32>,
    return
  }
  func.func @transform_0(%arg0: i32) -> (i32, i32) {
    %c0_i32 = arith.constant 0 : i32
    %c0_i32_0 = arith.constant 0 : i32
    return %arg0, %c0_i32 : i32, i32
  }
  func.func @transform_1(%arg0: i32) -> (i32, i32) {
    %c0_i32 = arith.constant 0 : i32
    %c0_i32_0 = arith.constant 0 : i32
    %c0_i32_1 = arith.constant 0 : i32
    return %c0_i32, %c0_i32_0 : i32, i32
  }
  func.func @transform_2(%arg0: i32) -> (i32, i32) {
    %c0_i32 = arith.constant 0 : i32
    %c0_i32_0 = arith.constant 0 : i32
    return %arg0, %c0_i32 : i32, i32
  }
}

module attributes {stable_mosaic.version = 11 : i64} {
  func.func @encoder_mlp_kernel(%arg0: i32, %arg1: memref<16x128xbf16, #tpu.memory_space<vmem>>, %arg2: memref<128x128xbf16, #tpu.memory_space<vmem>>, %arg3: memref<1x128xf32, #tpu.memory_space<vmem>>, %arg4: memref<128x128xbf16, #tpu.memory_space<vmem>>, %arg5: memref<1x128xf32, #tpu.memory_space<vmem>>, %arg6: memref<128x128xbf16, #tpu.memory_space<vmem>>, %arg7: memref<1x128xf32, #tpu.memory_space<vmem>>, %arg8: memref<128x128xbf16, #tpu.memory_space<vmem>>, %arg9: memref<1x128xf32, #tpu.memory_space<vmem>>, %arg10: memref<16x128xf32, #tpu.memory_space<vmem>>) attributes {dimension_semantics = [#tpu.dimension_semantics<parallel>], iteration_bounds = array<i64: 2>, scalar_prefetch = 0 : i64, scratch_operands = 0 : i64, tpu.core_type = #tpu.core_type<tc>, window_params = [{transform_indices = @transform_0, window_bounds = array<i64: 16, 128>}, {pipeline_mode = #tpu.pipeline_mode<synchronous>, transform_indices = @transform_1, window_bounds = array<i64: 128, 128>}, {pipeline_mode = #tpu.pipeline_mode<synchronous>, transform_indices = @transform_2, window_bounds = array<i64: 1, 128>}, {pipeline_mode = #tpu.pipeline_mode<synchronous>, transform_indices = @transform_3, window_bounds = array<i64: 128, 128>}, {pipeline_mode = #tpu.pipeline_mode<synchronous>, transform_indices = @transform_4, window_bounds = array<i64: 1, 128>}, {pipeline_mode = #tpu.pipeline_mode<synchronous>, transform_indices = @transform_5, window_bounds = array<i64: 128, 128>}, {pipeline_mode = #tpu.pipeline_mode<synchronous>, transform_indices = @transform_6, window_bounds = array<i64: 1, 128>}, {pipeline_mode = #tpu.pipeline_mode<synchronous>, transform_indices = @transform_7, window_bounds = array<i64: 128, 128>}, {pipeline_mode = #tpu.pipeline_mode<synchronous>, transform_indices = @transform_8, window_bounds = array<i64: 1, 128>}, {transform_indices = @transform_9, window_bounds = array<i64: 16, 128>}]} {
    %c0 = arith.constant 0 : index
    %c0_0 = arith.constant 0 : index
    %0 = vector.load %arg1[%c0, %c0_0] : memref<16x128xbf16, #tpu.memory_space<vmem>>, vector<16x128xbf16>
    %c0_1 = arith.constant 0 : index
    %c0_2 = arith.constant 0 : index
    %1 = vector.load %arg2[%c0_1, %c0_2] : memref<128x128xbf16, #tpu.memory_space<vmem>>, vector<128x128xbf16>
    %cst = arith.constant dense<0.000000e+00> : vector<16x128xf32>
    %2 = tpu.matmul %0, %1, %cst {dimension_numbers = #tpu.dot_dimension_numbers<[1], [0], [0], [1], [0, 0, 1, 1], [], []>} : vector<16x128xbf16>, vector<128x128xbf16>, vector<16x128xf32> -> vector<16x128xf32>
    %c0_3 = arith.constant 0 : index
    %c0_4 = arith.constant 0 : index
    %3 = vector.load %arg3[%c0_3, %c0_4] : memref<1x128xf32, #tpu.memory_space<vmem>>, vector<1x128xf32>
    %4 = vector.broadcast %3 : vector<1x128xf32> to vector<16x128xf32>
    %5 = arith.addf %2, %4 : vector<16x128xf32>
    %cst_5 = arith.constant 0.000000e+00 : f32
    %6 = vector.broadcast %cst_5 : f32 to vector<16x128xf32>
    %7 = arith.maximumf %5, %6 : vector<16x128xf32>
    %8 = arith.truncf %7 : vector<16x128xf32> to vector<16x128xbf16>
    %c0_6 = arith.constant 0 : index
    %c0_7 = arith.constant 0 : index
    %9 = vector.load %arg4[%c0_6, %c0_7] : memref<128x128xbf16, #tpu.memory_space<vmem>>, vector<128x128xbf16>
    %cst_8 = arith.constant dense<0.000000e+00> : vector<16x128xf32>
    %10 = tpu.matmul %8, %9, %cst_8 {dimension_numbers = #tpu.dot_dimension_numbers<[1], [0], [0], [1], [0, 0, 1, 1], [], []>} : vector<16x128xbf16>, vector<128x128xbf16>, vector<16x128xf32> -> vector<16x128xf32>
    %c0_9 = arith.constant 0 : index
    %c0_10 = arith.constant 0 : index
    %11 = vector.load %arg5[%c0_9, %c0_10] : memref<1x128xf32, #tpu.memory_space<vmem>>, vector<1x128xf32>
    %12 = vector.broadcast %11 : vector<1x128xf32> to vector<16x128xf32>
    %13 = arith.addf %10, %12 : vector<16x128xf32>
    %cst_11 = arith.constant 0.000000e+00 : f32
    %14 = vector.broadcast %cst_11 : f32 to vector<16x128xf32>
    %15 = arith.maximumf %13, %14 : vector<16x128xf32>
    %16 = arith.truncf %15 : vector<16x128xf32> to vector<16x128xbf16>
    %c0_12 = arith.constant 0 : index
    %c0_13 = arith.constant 0 : index
    %17 = vector.load %arg6[%c0_12, %c0_13] : memref<128x128xbf16, #tpu.memory_space<vmem>>, vector<128x128xbf16>
    %cst_14 = arith.constant dense<0.000000e+00> : vector<16x128xf32>
    %18 = tpu.matmul %16, %17, %cst_14 {dimension_numbers = #tpu.dot_dimension_numbers<[1], [0], [0], [1], [0, 0, 1, 1], [], []>} : vector<16x128xbf16>, vector<128x128xbf16>, vector<16x128xf32> -> vector<16x128xf32>
    %c0_15 = arith.constant 0 : index
    %c0_16 = arith.constant 0 : index
    %19 = vector.load %arg7[%c0_15, %c0_16] : memref<1x128xf32, #tpu.memory_space<vmem>>, vector<1x128xf32>
    %20 = vector.broadcast %19 : vector<1x128xf32> to vector<16x128xf32>
    %21 = arith.addf %18, %20 : vector<16x128xf32>
    %cst_17 = arith.constant 0.000000e+00 : f32
    %22 = vector.broadcast %cst_17 : f32 to vector<16x128xf32>
    %23 = arith.maximumf %21, %22 : vector<16x128xf32>
    %24 = arith.truncf %23 : vector<16x128xf32> to vector<16x128xbf16>
    %c0_18 = arith.constant 0 : index
    %c0_19 = arith.constant 0 : index
    %25 = vector.load %arg8[%c0_18, %c0_19] : memref<128x128xbf16, #tpu.memory_space<vmem>>, vector<128x128xbf16>
    %cst_20 = arith.constant dense<0.000000e+00> : vector<16x128xf32>
    %26 = tpu.matmul %24, %25, %cst_20 {dimension_numbers = #tpu.dot_dimension_numbers<[1], [0], [0], [1], [0, 0, 1, 1], [], []>} : vector<16x128xbf16>, vector<128x128xbf16>, vector<16x128xf32> -> vector<16x128xf32>
    %c0_21 = arith.constant 0 : index
    %c0_22 = arith.constant 0 : index
    %27 = vector.load %arg9[%c0_21, %c0_22] : memref<1x128xf32, #tpu.memory_space<vmem>>, vector<1x128xf32>
    %28 = vector.broadcast %27 : vector<1x128xf32> to vector<16x128xf32>
    %29 = arith.addf %26, %28 : vector<16x128xf32>
    %c0_23 = arith.constant 0 : index
    %c0_24 = arith.constant 0 : index
    %30 = vector.load %arg10[%c0_23, %c0_24] : memref<16x128xf32, #tpu.memory_space<vmem>>, vector<16x128xf32>
    tpu.vector_store %arg10[%c0_23, %c0_24], %29 {strides = array<i32>} : memref<16x128xf32, #tpu.memory_space<vmem>>, vector<16x128xf32>,
    return
  }
  func.func @transform_0(%arg0: i32) -> (i32, i32) {
    %c0_i32 = arith.constant 0 : i32
    %c0_i32_0 = arith.constant 0 : i32
    return %arg0, %c0_i32 : i32, i32
  }
  func.func @transform_1(%arg0: i32) -> (i32, i32) {
    %c0_i32 = arith.constant 0 : i32
    %c0_i32_0 = arith.constant 0 : i32
    %c0_i32_1 = arith.constant 0 : i32
    return %c0_i32, %c0_i32_0 : i32, i32
  }
  func.func @transform_2(%arg0: i32) -> (i32, i32) {
    %c0_i32 = arith.constant 0 : i32
    %c0_i32_0 = arith.constant 0 : i32
    %c0_i32_1 = arith.constant 0 : i32
    return %c0_i32, %c0_i32_0 : i32, i32
  }
  func.func @transform_3(%arg0: i32) -> (i32, i32) {
    %c0_i32 = arith.constant 0 : i32
    %c0_i32_0 = arith.constant 0 : i32
    %c0_i32_1 = arith.constant 0 : i32
    return %c0_i32, %c0_i32_0 : i32, i32
  }
  func.func @transform_4(%arg0: i32) -> (i32, i32) {
    %c0_i32 = arith.constant 0 : i32
    %c0_i32_0 = arith.constant 0 : i32
    %c0_i32_1 = arith.constant 0 : i32
    return %c0_i32, %c0_i32_0 : i32, i32
  }
  func.func @transform_5(%arg0: i32) -> (i32, i32) {
    %c0_i32 = arith.constant 0 : i32
    %c0_i32_0 = arith.constant 0 : i32
    %c0_i32_1 = arith.constant 0 : i32
    return %c0_i32, %c0_i32_0 : i32, i32
  }
  func.func @transform_6(%arg0: i32) -> (i32, i32) {
    %c0_i32 = arith.constant 0 : i32
    %c0_i32_0 = arith.constant 0 : i32
    %c0_i32_1 = arith.constant 0 : i32
    return %c0_i32, %c0_i32_0 : i32, i32
  }
  func.func @transform_7(%arg0: i32) -> (i32, i32) {
    %c0_i32 = arith.constant 0 : i32
    %c0_i32_0 = arith.constant 0 : i32
    %c0_i32_1 = arith.constant 0 : i32
    return %c0_i32, %c0_i32_0 : i32, i32
  }
  func.func @transform_8(%arg0: i32) -> (i32, i32) {
    %c0_i32 = arith.constant 0 : i32
    %c0_i32_0 = arith.constant 0 : i32
    %c0_i32_1 = arith.constant 0 : i32
    return %c0_i32, %c0_i32_0 : i32, i32
  }
  func.func @transform_9(%arg0: i32) -> (i32, i32) {
    %c0_i32 = arith.constant 0 : i32
    %c0_i32_0 = arith.constant 0 : i32
    return %arg0, %c0_i32 : i32, i32
  }
}

</mosaic_0001>

<bundles_post_ra>
// kernel: tpu_custom_call.1
= control target key start
LH: loop header
LB: loop body
LE: loop exit
PB: predicated region body
PF: predicated region fallthrough
CT: control target
= control target key end

     0   :  { %7 = vsyncpa [#allocation3], 0  ;;  %s633_s0 = inlined_call_operand.hbm [shape: f32[16,128], index: 0, kind: input, shape index: {}]   ;;  %s634_s1 = inlined_call_operand.hbm [shape: f32[8,128], index: 1, kind: input, shape index: {}]   ;;  %s635_s2 = inlined_call_operand.hbm [shape: f32[16,128], index: 2, kind: output, shape index: {}]  }
   0x1   :  { %9 = vsyncpa [#allocation3 + $0x1], 0 }
   0x2   :  { %10 = vsyncpa [#allocation6], 0 }
   0x3   :  { %11 = vsyncpa [#allocation4], 0 }
   0x4   :  { %13 = vsyncpa [#allocation4 + $0x1], 0  ;;  %s495_s9 = smov 0   ;;  %s497_s10 = smov 0  }
   0x5   :  { %s499_s11 = smov 0   ;;  %s501_s12 = smov 0  }
   0x6 LB: > { %s516_s13 = sadd.s32 4294967295, %s477_s12   ;;  %s276_s14 = sadd.s32 4294967294, %s477_s12   ;;  %s477_s12 = sphi %s501_s12, %s645_s12   ;;  %s473_s11 = sphi %s499_s11, %s644_s11   ;;  %s469_s10 = sphi %s497_s10, %s643_s10   ;;  %s465_s9 = sphi %s495_s9, %s642_s9  }
   0x7   : > { %p39_p0 = scmp.ne.s32.totalorder %s469_s10, %s465_s9  ;;  %p40_p1 = scmp.eq.s32.totalorder %s516_s13, 0 }
   0x8   : > { %p84_p2 = scmp.eq.s32.totalorder %s516_s13, 1  ;;  %p90_p3 = scmp.eq.s32.totalorder %s276_s14, 1 }
   0x9   : > { %p525_p4 = por %p40_p1, %p39_p0  ;;  %p277_p5 = scmp.ge.s32.totalorder %s477_s12, 1 }
   0xa   : > { %p530_p6 = por %p90_p3, %p39_p0  ;;  %p97_p7 = scmp.lt.s32.totalorder %s477_s12, 3 }
   0xb   : > { %s109_s19 = sshll.u32 %s634_s1, 4  ;;  %s479_s21 = smov [#allocation5]   ;;  %s110_s19 = int_to_ptr.hbm [resolvable:$true] %s109_s19 }
   0xc   : > { %p538_p8 = pnand %p277_p5, %p97_p7  ;;  %s111_s22 = sshll.u32 %s479_s21, 4  ;;  %s112_s22 = int_to_ptr.vmem [resolvable:$true] %s111_s22 }
   0xd   : > { %s548_s23 = sadd.s32 1, %s477_s12   ;;  %s26_s24 = sadd.s32 1, %s473_s11 }
   0xe   : > { %p298_p10 = pneg %p538_p8  ;;  %s23_s25 = ssub.s32 %s477_s12, %s548_s23 }
   0xf   : > { %p24_p12 = scmp.eq.s32.totalorder %s23_s25, 0  ;;  %p33_p13 = scmp.ne.s32.totalorder %s473_s11, %s469_s10 }
  0x10   : > { %p299_p11 = pnand %p298_p10, %p40_p1  ;;  %p34_p0 = scmp.eq.s32.totalorder %s477_s12, 0 }
  0x11   : > { %s557_s26 = scalar_select %p24_p12, %s473_s11, %s26_s24  }
  0x12   : > { %301 = dma.hbm_to_vmem [thread:$0]  (!%p299_p11), %s110_s19, 128, %s112_s22, [#allocation6]  }
  0x13   : > { %p561_p3 = por %p84_p2, %p33_p13  ;;  %p311_p5 = scmp.lt.s32.totalorder %s477_s12, 2 }
  0x14   : > { %s122_s28 = sand.u32 1, %s473_s11   ;;  %s281_s29 = sshll.u32 %s477_s12, 3 }
  0x15   : > { %p35_p7 = por %p34_p0, %p33_p13  ;;  %s280_s30 = sshll.u32 %s122_s28, 3 }
  0x16   : > { %s130_s5 = scalar_lea.hbm %s633_s0, %s281_s29  ;;  %s126_s7 = scalar_lea.vmem [#allocation2], %s280_s30 }
  0x17   : > { %s132_s6 = sshll.u32 %s130_s5, 4  ;;  %s134_s8 = sshll.u32 %s126_s7, 4  ;;  %s133_s6 = int_to_ptr.hbm [resolvable:$true] %s132_s6  ;;  %s135_s8 = int_to_ptr.vmem [resolvable:$true] %s134_s8 }
  0x18   : > { %p571_p10 = pnand %p311_p5, %p35_p7  ;;  %s123_s17 = scalar_lea.sflag [#allocation3], %s122_s28 }
  0x19   : > { %s377_s18 = sshra.s32 %s133_s6, 4  ;;  %s384_s24 = scalar_lea.hbm %s633_s0, 16  ;;  %s378_s18 = int_to_ptr.hbm [resolvable:$true] %s377_s18 }
  0x1a   : > { %s379_s19 = scalar_lea.hbm %s378_s18, 8  ;;  %p381_p11 = pneg %p571_p10 }
  0x1b   : > { %p380_p2 = scmp.ne.s32.totalorder %s378_s18, %s379_s19  ;;  %p385_p0 = scmp.lt.s32.totalorder %s378_s18, %s633_s0 }
  0x1c   : > { %p386_p5 = scmp.lt.s32.totalorder %s384_s24, %s379_s19 }
  0x1d   : > { %p382_p12 = pnand %p381_p11, %p380_p2 }
  0x1e   : > { %p387_p7 = por %p386_p5, %p385_p0 }
  0x1f   : > { %p383_p13 = pneg %p382_p12 }
  0x21   : > { %p388_p9 = pnand %p387_p7, %p383_p13 }
  0x23   : > { %391 = shalt.err (!%p388_p9)
}
  0x24   : > { %305 = dma.hbm_to_vmem [thread:$0]  (!%p571_p10), %s133_s6, 128, %s135_s8, %s123_s17  }
  0x25   : > { %143 = sbr.rel (%p538_p8) target bundleno = 60 (0x3c), region = 28  ;;  %s588_s28 = sand.u32 (!%p538_p8), 1, %s469_s10  }
  0x26   : > { %s283_s30 = sshll.u32 (!%p538_p8), %s588_s28, 3  ;;  %s146_s3 = scalar_lea.sflag (!%p538_p8), [#allocation3], %s588_s28 }
  0x27   : > { %s149_s4 = scalar_lea.vmem (!%p538_p8), [#allocation2], %s283_s30 }
  0x2a   : > { %452 = dma.done.wait (%p525_p4), %s146_s3, 128  }
  0x2b   : > { %454 = vsyncadd (%p525_p4), %s146_s3, 4294967168 }
  0x2c   : > { %456 = dma.done.wait (%p40_p1), [#allocation6], 128  }
  0x2d   : > { %458 = vsyncadd (%p40_p1), [#allocation6], 4294967168  ;;  %s287_s20 = sshll.u32 %s516_s13, 3  ;;  %s175_s8 = scalar_lea.vmem [#allocation7], %s283_s30  ;;  %v176_v0 = vld [vmem:[%s149_s4] sm:$0xff]  ;;  %v177_v1 = vld [vmem:[#allocation5] sm:$0xff] }
  0x2e   : > { %s191_s7 = scalar_lea.hbm %s635_s2, %s287_s20  ;;  %s193_s14 = sshll.u32 %s175_s8, 4  ;;  %v178_v2 = vadd.f32 %v177_v1, %v176_v0  ;;  %s194_s14 = int_to_ptr.vmem [resolvable:$true] %s193_s14 }
  0x2f   : > { %s195_s17 = sshll.u32 %s191_s7, 4  ;;  %s181_s15 = scalar_lea.sflag [#allocation4], %s588_s28  ;;  %s196_s17 = int_to_ptr.hbm [resolvable:$true] %s195_s17 }
  0x30   : > { %179 = vst [vmem:[%s175_s8] sm:$0xff] %v178_v2  ;;  %s421_s18 = sshra.s32 %s196_s17, 4  ;;  %s427_s22 = scalar_lea.hbm %s635_s2, 16  ;;  %s422_s18 = int_to_ptr.hbm [resolvable:$true] %s421_s18 }
  0x31   : > { %s423_s19 = scalar_lea.hbm %s422_s18, 8  ;;  %p428_p9 = scmp.lt.s32.totalorder %s422_s18, %s635_s2 }
  0x32   : > { %p424_p1 = scmp.ne.s32.totalorder %s422_s18, %s423_s19  ;;  %p429_p10 = scmp.lt.s32.totalorder %s427_s22, %s423_s19 }
  0x34   : > { %p425_p4 = pnand %p424_p1, %p561_p3  ;;  %p430_p2 = por %p429_p10, %p428_p9 }
  0x36   : > { %p426_p8 = pneg %p425_p4 }
  0x38   : > { %p431_p11 = pnand %p430_p2, %p426_p8 }
  0x3a   : > { %434 = shalt.err (!%p431_p11)
}
  0x3b   : > { %296 = dma.vmem_to_hbm [thread:$0]  (%p561_p3), %s194_s14, 128, %s196_s17, %s181_s15  }
  0x3c PF: > { %s207_s29 = sand.u32 1, %s465_s9   ;;  %p641_p12 = scmp.ge.s32.totalorder %s477_s12, 2 }
  0x3d   : > { %s208_s28 = scalar_lea.sflag [#allocation4], %s207_s29 }
  0x3e   : > { %p307_p13 = pnand %p641_p12, %p530_p6 }
  0x40   : > { %p308_p0 = pneg %p307_p13 }
  0x42   : > { %460 = dma.done.wait (%p308_p0), %s208_s28, 128  }
  0x43   : > { %462 = vsyncadd (%p308_p0), %s208_s28, 4294967168  ;;  %p16_p5 = scmp.ge.s32.totalorder %s548_s23, 4   ;;  %s642_s9 = smov %s469_s10 }
  0x44   : > { %s643_s10 = smov %s473_s11  ;;  %s644_s11 = smov %s557_s26 }
  0x45   : > { %s645_s12 = smov %s548_s23  ;;  %18 = sbr.rel (!%p16_p5) target bundleno = 6 (0x6), region = 77 }
  0x4a   :  { %214 = vsyncpa [#allocation3], 1 }
  0x4b   :  { %216 = vsyncpa [#allocation3 + $0x1], 1 }
  0x4c   :  { %217 = vsyncpa [#allocation6], 1 }
  0x4d   :  { %218 = vsyncpa [#allocation4], 1 }
  0x4e   :  { %220 = vsyncpa [#allocation4 + $0x1], 1 }

// kernel: _forward_impl.1
= control target key start
LH: loop header
LB: loop body
LE: loop exit
PB: predicated region body
PF: predicated region fallthrough
CT: control target
= control target key end

     0   :  { %14 = vsyncpa [#allocation3], 0  ;;  %s1369_s0 = inlined_call_operand.vmem [shape: bf16[32,128], index: 0, kind: input, shape index: {}]   ;;  %s1370_s1 = inlined_call_operand.hbm [shape: bf16[128,128], index: 1, kind: input, shape index: {}]   ;;  %s1371_s2 = inlined_call_operand.vmem [shape: f32[1,128], index: 2, kind: input, shape index: {}]   ;;  %s1372_s3 = inlined_call_operand.hbm [shape: bf16[128,128], index: 3, kind: input, shape index: {}]   ;;  %s1373_s4 = inlined_call_operand.vmem [shape: f32[1,128], index: 4, kind: input, shape index: {}]   ;;  %s1374_s5 = inlined_call_operand.hbm [shape: bf16[128,128], index: 5, kind: input, shape index: {}]   ;;  %s1375_s6 = inlined_call_operand.vmem [shape: f32[1,128], index: 6, kind: input, shape index: {}]   ;;  %s1376_s7 = inlined_call_operand.hbm [shape: bf16[128,128], index: 7, kind: input, shape index: {}]   ;;  %s1377_s8 = inlined_call_operand.vmem [shape: f32[1,128], index: 8, kind: input, shape index: {}]   ;;  %s1378_s9 = inlined_call_operand.vmem [shape: f32[32,128], index: 9, kind: output, shape index: {}]  }
   0x1   :  { %15 = vsyncpa [#allocation5], 0 }
   0x2   :  { %16 = vsyncpa [#allocation8], 0  ;;  %s1282_s30 = smov 0  }
   0x3 LB: > { %s847_s10 = sadd.s32 4294967295, %s1224_s30   ;;  %p849_p0 = scmp.ge.s32.totalorder %s1224_s30, 1  ;;  %s1224_s30 = sphi %s1282_s30, %s22_s30  }
   0x4   : > { %p247_p1 = scmp.lt.s32.totalorder %s1224_s30, 3  ;;  %p1292_p2 = scmp.eq.s32.totalorder %s847_s10, 0 }
   0x5   : > { %s275_s14 = sshll.u32 %s1372_s3, 4  ;;  %s258_s18 = sshll.u32 %s1370_s1, 4  ;;  %s276_s14 = int_to_ptr.hbm [resolvable:$true] %s275_s14  ;;  %s259_s18 = int_to_ptr.hbm [resolvable:$true] %s258_s18 }
   0x6   : > { %p1299_p3 = pnand %p849_p0, %p247_p1  ;;  %s1226_s19 = smov [#allocation4]  }
   0x7   : > { %s277_s20 = sshll.u32 %s1226_s19, 4  ;;  %s1227_s22 = smov [#allocation2]   ;;  %s278_s20 = int_to_ptr.vmem [resolvable:$true] %s277_s20 }
   0x8   : > { %p1047_p4 = pneg %p1299_p3  ;;  %s260_s23 = sshll.u32 %s1227_s22, 4  ;;  %s261_s23 = int_to_ptr.vmem [resolvable:$true] %s260_s23 }
   0x9   : > { %s292_s26 = sshll.u32 %s1374_s5, 4  ;;  %s1228_s27 = smov 64   ;;  %s293_s26 = int_to_ptr.hbm [resolvable:$true] %s292_s26 }
   0xa   : > { %p1310_p5 = pnand %p1292_p2, %p1047_p4  ;;  %s1229_s28 = smov 4  }
   0xb   : > { %s1230_s29 = smov [#allocation6]   ;;  %s309_s17 = sshll.u32 %s1376_s7, 4  ;;  %s310_s17 = int_to_ptr.hbm [resolvable:$true] %s309_s17 }
   0xc   : > { %1053 = dma.hbm_to_vmem [thread:$0]  (!%p1310_p5), %s276_s14, 1024, %s278_s20, [#allocation5], %s1228_s27, %s1228_s27, %s1229_s28  }
   0xd   : > { %1050 = dma.hbm_to_vmem [thread:$0]  (!%p1310_p5), %s259_s18, 1024, %s261_s23, [#allocation3], %s1228_s27, %s1228_s27, %s1229_s28  }
   0xe   : > { %s294_s12 = sshll.u32 %s1230_s29, 4  ;;  %s1231_s19 = smov [#allocation7]   ;;  %s295_s12 = int_to_ptr.vmem [resolvable:$true] %s294_s12 }
   0xf   : > { %1056 = dma.hbm_to_vmem [thread:$0]  (!%p1310_p5), %s293_s26, 1024, %s295_s12, [#allocation5], %s1228_s27, %s1228_s27, %s1229_s28  }
  0x10   : > { %s311_s22 = sshll.u32 %s1231_s19, 4  ;;  %339 = sbr.rel (%p1299_p3) target bundleno = 627 (0x273), region = 56  ;;  %s312_s22 = int_to_ptr.vmem [resolvable:$true] %s311_s22 }
  0x11   : > { %1059 = dma.hbm_to_vmem [thread:$0]  (!%p1310_p5), %s310_s17, 1024, %s312_s22, [#allocation8], %s1228_s27, %s1228_s27, %s1229_s28  }
  0x15   : > { %1211 = dma.done.wait (%p1292_p2), [#allocation3], 1024  }
  0x16   : > { %1213 = vsyncadd (%p1292_p2), [#allocation3], 4294966272 }
  0x17   : > { %1215 = dma.done.wait (%p1292_p2), [#allocation5], 2048  }
  0x18   : > { %1217 = vsyncadd (%p1292_p2), [#allocation5], 4294965248 }
  0x19   : > { %1219 = dma.done.wait (%p1292_p2), [#allocation8], 1024  }
  0x1a   : > { %1221 = vsyncadd (%p1292_p2), [#allocation8], 4294966272  ;;  %v1006_v0 = vld [vmem:[#allocation2 + $0x38] sm:$0xff]  ;;  %v1005_v1 = vld [vmem:[#allocation2 + $0x30] sm:$0xff]  ;;  %s860_s14 = sshll.u32 %s847_s10, 1 }
  0x1b   : > { %479 = vmatpush.bf16.msra.mxu0 %v1006_v0  ;;  %v1014_v2 = vld [vmem:[#allocation4 + $0x38] sm:$0xff]  ;;  %v1013_v3 = vld [vmem:[#allocation4 + $0x30] sm:$0xff]  ;;  %v1004_v4 = vld [vmem:[#allocation2 + $0x28] sm:$0xff]  ;;  %p392_p6 = scmp.lt.s32.totalorder %s860_s14, 3 }
  0x1c   : > { %564 = vmatpush.bf16.msra.mxu1 %v1014_v2  ;;  %v1012_v5 = vld [vmem:[#allocation4 + $0x28] sm:$0xff]  ;;  %v1003_v6 = vld [vmem:[#allocation2 + $0x20] sm:$0xff]  ;;  %v1002_v8 = vld [vmem:[#allocation2 + $0x18] sm:$0xff] }
  0x1d   : > { %v1011_v7 = vld [vmem:[#allocation4 + $0x20] sm:$0xff]  ;;  %v1001_v9 = vld [vmem:[#allocation2 + $0x10] sm:$0xff]  ;;  %s1383_s14 = smov (!%p392_p6, %s860_s14), 3  ;;  %v1000_v10 = vld [vmem:[#allocation2 + $0x8] sm:$0xff] }
  0x1e   : > { %s861_s11 = sshll.u32 %s1383_s14, 2  ;;  %v999_v11 = vld [vmem:[#allocation2] sm:$0xff]  ;;  %v1010_v13 = vld [vmem:[#allocation4 + $0x18] sm:$0xff]  ;;  %v1009_v14 = vld [vmem:[#allocation4 + $0x10] sm:$0xff]  ;;  %s863_s27 = sshll.u32 %s1383_s14, 3 }
  0x1f   : > { %480 = vmatpush.bf16.msra.mxu0 %v1005_v1  ;;  %s395_s10 = scalar_lea.vmem %s1369_s0, %s861_s11  ;;  %v1008_v15 = vld [vmem:[#allocation4 + $0x8] sm:$0xff]  ;;  %v1007_v16 = vld [vmem:[#allocation4] sm:$0xff]  ;;  %v1022_v17 = vld [vmem:[#allocation6 + $0x38] sm:$0xff]  ;;  %s401_s16 = scalar_lea.vmem %s1378_s9, %s863_s27 }
  0x20   : > { %565 = vmatpush.bf16.msra.mxu1 %v1013_v3  ;;  %v998_v12 = vld [vmem:[%s395_s10] sm:$0xff]  ;;  %649 = vmatpush.bf16.msra.mxu2 %v1022_v17  ;;  %v1021_v18 = vld [vmem:[#allocation6 + $0x30] sm:$0xff]  ;;  %v1020_v19 = vld [vmem:[#allocation6 + $0x28] sm:$0xff] }
  0x21   : > { %v1019_v20 = vld [vmem:[#allocation6 + $0x20] sm:$0xff]  ;;  %v1018_v29 = vld [vmem:[#allocation6 + $0x18] sm:$0xff]  ;;  %v1017_v30 = vld [vmem:[#allocation6 + $0x10] sm:$0xff] }
  0x22   : > { %v1082_v22 = vld [vmem:[%s1371_s2] ss:$0 sm:$0xff]  ;;  %v1016_v31 = vld [vmem:[#allocation6 + $0x8] sm:$0xff]  ;;  %v1030_v33 = vld [vmem:[#allocation7 + $0x38] sm:$0xff] }
  0x23   : > { %481 = vmatpush.bf16.msra.mxu0 %v1004_v4  ;;  %v1015_v32 = vld [vmem:[#allocation6] sm:$0xff]  ;;  %734 = vmatpush.bf16.msra.mxu3 %v1030_v33  ;;  %v1029_v34 = vld [vmem:[#allocation7 + $0x30] sm:$0xff]  ;;  %v1028_v35 = vld [vmem:[#allocation7 + $0x28] sm:$0xff] }
  0x24   : > { %566 = vmatpush.bf16.msra.mxu1 %v1012_v5  ;;  %650 = vmatpush.bf16.msra.mxu2 %v1021_v18  ;;  %v1027_v36 = vld [vmem:[#allocation7 + $0x20] sm:$0xff]  ;;  %v1026_v45 = vld [vmem:[#allocation7 + $0x18] sm:$0xff]  ;;  %v1025_v46 = vld [vmem:[#allocation7 + $0x10] sm:$0xff] }
  0x25   : > { %v1083_v38 = vld [vmem:[%s1373_s4] ss:$0 sm:$0xff]  ;;  %v1024_v47 = vld [vmem:[#allocation7 + $0x8] sm:$0xff] }
  0x26   : > { %v1023_v48 = vld [vmem:[#allocation7] sm:$0xff] }
  0x27   : > { %482 = vmatpush.bf16.msra.mxu0 %v1003_v6  ;;  %735 = vmatpush.bf16.msra.mxu3 %v1029_v34  ;;  %v1084_v50 = vld [vmem:[%s1375_s6] ss:$0 sm:$0xff] }
  0x28   : > { %567 = vmatpush.bf16.msra.mxu1 %v1011_v7  ;;  %651 = vmatpush.bf16.msra.mxu2 %v1020_v19  ;;  %v1085_v57 = vld [vmem:[%s1377_s8] ss:$0 sm:$0xff] }
  0x2b   : > { %483 = vmatpush.bf16.msra.mxu0 %v1002_v8  ;;  %736 = vmatpush.bf16.msra.mxu3 %v1028_v35 }
  0x2c   : > { %568 = vmatpush.bf16.msra.mxu1 %v1010_v13  ;;  %652 = vmatpush.bf16.msra.mxu2 %v1019_v20 }
  0x2f   : > { %484 = vmatpush.bf16.msra.mxu0 %v1001_v9  ;;  %737 = vmatpush.bf16.msra.mxu3 %v1027_v36 }
  0x30   : > { %569 = vmatpush.bf16.msra.mxu1 %v1009_v14  ;;  %653 = vmatpush.bf16.msra.mxu2 %v1018_v29 }
  0x33   : > { %485 = vmatpush.bf16.msra.mxu0 %v1000_v10  ;;  %738 = vmatpush.bf16.msra.mxu3 %v1026_v45 }
  0x34   : > { %570 = vmatpush.bf16.msra.mxu1 %v1008_v15  ;;  %654 = vmatpush.bf16.msra.mxu2 %v1017_v30 }
  0x37   : > { %486 = vmatpush.bf16.msra.mxu0 %v999_v11  ;;  %739 = vmatpush.bf16.msra.mxu3 %v1025_v46 }
  0x38   : > { %571 = vmatpush.bf16.msra.mxu1 %v1007_v16  ;;  %655 = vmatpush.bf16.msra.mxu2 %v1016_v31 }
  0x3a   : > { %487 = vmatmul.bf16.vlgmr.msra.gmra.mxu0 %v998_v12 }
  0x3b   : > { %740 = vmatpush.bf16.msra.mxu3 %v1024_v47 }
  0x3c   : > { %656 = vmatpush.bf16.msra.mxu2 %v1015_v32 }
  0x3f   : > { %741 = vmatpush.bf16.msra.mxu3 %v1023_v48 }
  0xb7   : > { %v488_v21 = vpop.f32.mrf.mxu0 }
  0xb8   : > { %v489_v23 = vadd.f32 %v1082_v22, %v488_v21 }
  0xba   : > { %v493_v26 = vmax.f32 %v489_v23, 0.0 }
  0xbf   : > { %v490_v24 = vpop.f32.mrf.mxu0 }
  0xc0   : > { %v491_v25 = vadd.f32 %v1082_v22, %v490_v24 }
  0xc2   : > { %v494_v27 = vmax.f32 %v491_v25, 0.0 }
  0xc4   : > { %v495_v28 = vpack.c.bf16 %v494_v27, %v493_v26 }
  0xc6   : > { %572 = vmatmul.bf16.vlgmr.msra.gmra.mxu1 %v495_v28 }
 0x143   : > { %v573_v37 = vpop.f32.mrf.mxu1 }
 0x144   : > { %v574_v39 = vadd.f32 %v1083_v38, %v573_v37 }
 0x146   : > { %v578_v42 = vmax.f32 %v574_v39, 0.0 }
 0x14b   : > { %v575_v40 = vpop.f32.mrf.mxu1 }
 0x14c   : > { %v576_v41 = vadd.f32 %v1083_v38, %v575_v40 }
 0x14e   : > { %v579_v43 = vmax.f32 %v576_v41, 0.0 }
 0x150   : > { %v580_v44 = vpack.c.bf16 %v579_v43, %v578_v42 }
 0x152   : > { %657 = vmatmul.bf16.vlgmr.msra.gmra.mxu2 %v580_v44 }
 0x1d5   : > { %v658_v49 = vpop.f32.mrf.mxu2 }
 0x1d6   : > { %v659_v51 = vadd.f32 %v1084_v50, %v658_v49 }
 0x1d8   : > { %v663_v54 = vmax.f32 %v659_v51, 0.0 }
 0x1dd   : > { %v660_v52 = vpop.f32.mrf.mxu2 }
 0x1de   : > { %v661_v53 = vadd.f32 %v1084_v50, %v660_v52 }
 0x1e0   : > { %v664_v55 = vmax.f32 %v661_v53, 0.0 }
 0x1e2   : > { %v665_v56 = vpack.c.bf16 %v664_v55, %v663_v54 }
 0x1e4   : > { %742 = vmatmul.bf16.vlgmr.msra.gmra.mxu3 %v665_v56 }
 0x267   : > { %v743_v58 = vpop.f32.mrf.mxu3 }
 0x268   : > { %v744_v59 = vadd.f32 %v1085_v57, %v743_v58 }
 0x26a   : > { %748 = vst [vmem:[%s401_s16] sm:$0xff] %v744_v59 }
 0x26f   : > { %v745_v60 = vpop.f32.mrf.mxu3 }
 0x270   : > { %v746_v61 = vadd.f32 %v1085_v57, %v745_v60 }
 0x272   : > { %749 = vst [vmem:[%s401_s16 + $0x8] sm:$0xff] %v746_v61 }
 0x273 PF: > { %s22_s30 = sadd.s32 1, %s1224_s30  }
 0x274   : > { %p19_p7 = scmp.ge.s32.totalorder %s22_s30, 4  }
 0x276   :  { %21 = sbr.rel (!%p19_p7) target bundleno = 3 (0x3), region = 103 }
 0x27b   :  { %772 = vsyncpa [#allocation3], 1 }
 0x27c   :  { %774 = vsyncpa [#allocation3 + $0x1], 1 }
 0x27d   :  { %775 = vsyncpa [#allocation5], 1 }
 0x27e   :  { %776 = vsyncpa [#allocation8], 1 }

</bundles_post_ra>
